<compile_context>
chip_gen: v5e
topology: v5e:2x2
jax: 0.10.0
libtpu: 0.0.40
codegen_flags: <defaults>
</compile_context>

<pallas_src>
import functools

import jax
import jax.numpy as jnp
from jax import lax
from jax.experimental import pallas as pl
from jax.experimental.pallas import tpu as pltpu

BN_EPS = 1e-5
LANE = 128


def _residual_block_kernel(*refs, add_residual: bool):
    if add_residual:
        x_ref, w_ref, b_ref, g_ref, beta_ref, res_ref, o_ref, acc_ref = refs
    else:
        x_ref, w_ref, b_ref, g_ref, beta_ref, o_ref, acc_ref = refs
        res_ref = None

    k = pl.program_id(1)

    @pl.when(k == 0)
    def _():
        acc_ref[...] = jnp.zeros_like(acc_ref)

    # Linear partial product: x_blk (B, TK) @ W_blk (TN, TK)^T -> (B, TN),
    # accumulated in f32 on the MXU.  Operands keep their input dtype.
    acc_ref[...] += lax.dot_general(
        x_ref[...], w_ref[...],
        dimension_numbers=(((1,), (1,)), ((), ())),
        preferred_element_type=jnp.float32)

    @pl.when(k == pl.num_programs(1) - 1)
    def _():
        out = acc_ref[...] + b_ref[...].astype(jnp.float32)        # (B, TN)

        # BatchNorm1d, training-mode batch statistics (biased variance).
        # Correct because the full batch B is inside every block.
        mean = jnp.mean(out, axis=0, keepdims=True)
        centered = out - mean
        var = jnp.mean(centered * centered, axis=0, keepdims=True)
        inv_std = lax.rsqrt(var + BN_EPS)
        y = g_ref[...].astype(jnp.float32) * (centered * inv_std) \
            + beta_ref[...].astype(jnp.float32)

        # Swish: y * sigmoid(y)  (sigmoid lands on the EUP slot)
        y = y * jax.nn.sigmoid(y)

        if add_residual:
            y = y + res_ref[...].astype(jnp.float32)

        o_ref[...] = y.astype(o_ref.dtype)


def _pad_to(n, m):
    return ((n + m - 1) // m) * m


def residual_block(x, weight, bias, gamma, beta, *, tn=512, tk=512):
    """x: (B, F_in); weight: (F_out, F_in); bias/gamma/beta: (F_out,)."""
    B, f_in = x.shape
    f_out = weight.shape[0]
    add_residual = (f_in == f_out)   # static shape check, like PyTorch forward

    # Lane-dense tiles: multiples of 128, capped by the (padded) problem size.
    tn = min(tn, _pad_to(f_out, LANE))
    tk = min(tk, _pad_to(f_in, LANE))
    if add_residual:
        tn = tk = min(tn, tk)        # residual needs matching feature tiling

    f_out_p = _pad_to(f_out, tn)
    f_in_p = _pad_to(f_in, tk)

    # Zero-pad features to tile boundaries (padded output columns come out as
    # exactly zero and are sliced off below).
    x_p = x if f_in_p == f_in else jnp.pad(x, ((0, 0), (0, f_in_p - f_in)))
    if (f_out_p != f_out) or (f_in_p != f_in):
        w_p = jnp.pad(weight, ((0, f_out_p - f_out), (0, f_in_p - f_in)))
    else:
        w_p = weight

    def _pad_row(v):
        v = v.reshape(1, f_out)
        if f_out_p != f_out:
            v = jnp.pad(v, ((0, 0), (0, f_out_p - f_out)))
        return v

    b_row, g_row, beta_row = _pad_row(bias), _pad_row(gamma), _pad_row(beta)

    grid = (f_out_p // tn, f_in_p // tk)   # (output tiles, reduction steps)

    in_specs = [
        pl.BlockSpec((B, tk), lambda j, k: (0, k)),    # x, streamed over K
        pl.BlockSpec((tn, tk), lambda j, k: (j, k)),   # W in natural layout
        pl.BlockSpec((1, tn), lambda j, k: (0, j)),    # bias
        pl.BlockSpec((1, tn), lambda j, k: (0, j)),    # gamma
        pl.BlockSpec((1, tn), lambda j, k: (0, j)),    # beta
    ]
    inputs = [x_p, w_p, b_row, g_row, beta_row]
    if add_residual:
        # Residual columns aligned with the output tile (constant over k ->
        # fetched once per output tile, not per reduction step).
        in_specs.append(pl.BlockSpec((B, tn), lambda j, k: (0, j)))
        inputs.append(x_p)

    kernel = functools.partial(_residual_block_kernel, add_residual=add_residual)

    out_p = pl.pallas_call(
        kernel,
        out_shape=jax.ShapeDtypeStruct((B, f_out_p), x.dtype),
        grid_spec=pltpu.PrefetchScalarGridSpec(
            num_scalar_prefetch=0,
            grid=grid,
            in_specs=in_specs,
            out_specs=pl.BlockSpec((B, tn), lambda j, k: (0, j)),
            scratch_shapes=[pltpu.VMEM((B, tn), jnp.float32)],
        ),
        compiler_params=pltpu.CompilerParams(
            dimension_semantics=("parallel", "arbitrary"),
            vmem_limit_bytes=48 * 1024 * 1024,
        ),
    )(*inputs)

    return out_p[:, :f_out] if f_out_p != f_out else out_p


def _reference(x, weight, bias, gamma, beta):
    out = x @ weight.T + bias
    mean = out.mean(axis=0, keepdims=True)
    var = ((out - mean) ** 2).mean(axis=0, keepdims=True)
    y = gamma * (out - mean) / jnp.sqrt(var + BN_EPS) + beta
    y = y * jax.nn.sigmoid(y)
    if x.shape == y.shape:
        y = y + x
    return y


if __name__ == "__main__":
    key = jax.random.PRNGKey(0)
    B, in_features, out_features = 8, 32, 32   # equal -> residual path taken

    kx, kw, kb, kg, kbeta = jax.random.split(key, 5)
    x = jax.random.normal(kx, (B, in_features), dtype=jnp.float32)

    # Deterministic synthetic parameters (nn.Linear-like scale; BN affine
    # params perturbed away from identity so the BN path is exercised).
    bound = 1.0 / jnp.sqrt(in_features)
    weight = jax.random.uniform(kw, (out_features, in_features),
                                minval=-bound, maxval=bound, dtype=jnp.float32)
    bias = jax.random.uniform(kb, (out_features,),
                              minval=-bound, maxval=bound, dtype=jnp.float32)
    gamma = 1.0 + 0.1 * jax.random.normal(kg, (out_features,), dtype=jnp.float32)
    beta = 0.1 * jax.random.normal(kbeta, (out_features,), dtype=jnp.float32)

    out = residual_block(x, weight, bias, gamma, beta)
    out = jax.block_until_ready(out)

    ref = _reference(x, weight, bias, gamma, beta)
    assert out.shape == (B, out_features)
    assert jnp.allclose(out, ref, atol=1e-5, rtol=1e-5), "mismatch vs JAX reference"

    print("KERNEL_OK")
</pallas_src>

<mosaic_0001>
module attributes {stable_mosaic.version = 11 : i64} {
  func.func @_residual_block_kernel(%arg0: i32, %arg1: i32, %arg2: memref<8x128xf32, #tpu.memory_space<vmem>>, %arg3: memref<128x128xf32, #tpu.memory_space<vmem>>, %arg4: memref<1x128xf32, #tpu.memory_space<vmem>>, %arg5: memref<1x128xf32, #tpu.memory_space<vmem>>, %arg6: memref<1x128xf32, #tpu.memory_space<vmem>>, %arg7: memref<8x128xf32, #tpu.memory_space<vmem>>, %arg8: memref<8x128xf32, #tpu.memory_space<vmem>>, %arg9: memref<8x128xf32, #tpu.memory_space<vmem>>) attributes {dimension_semantics = [#tpu.dimension_semantics<parallel>, #tpu.dimension_semantics<arbitrary>], iteration_bounds = array<i64: 1, 1>, scalar_prefetch = 0 : i64, scratch_operands = 1 : i64, tpu.core_type = #tpu.core_type<tc>, window_params = [{transform_indices = @transform_0, window_bounds = array<i64: 8, 128>}, {transform_indices = @transform_1, window_bounds = array<i64: 128, 128>}, {transform_indices = @transform_2, window_bounds = array<i64: 1, 128>}, {transform_indices = @transform_3, window_bounds = array<i64: 1, 128>}, {transform_indices = @transform_4, window_bounds = array<i64: 1, 128>}, {transform_indices = @transform_5, window_bounds = array<i64: 8, 128>}, {transform_indices = @transform_6, window_bounds = array<i64: 8, 128>}]} {
    %c0_i32 = arith.constant 0 : i32
    %0 = arith.cmpi eq, %arg1, %c0_i32 : i32
    %1 = arith.extui %0 : i1 to i32
    %c0_i32_0 = arith.constant 0 : i32
    %2 = arith.cmpi ne, %1, %c0_i32_0 : i32
    scf.if %2 {
      %cst_10 = arith.constant 0.000000e+00 : f32
      %12 = vector.broadcast %cst_10 : f32 to vector<8x128xf32>
      %c0_11 = arith.constant 0 : index
      %c0_12 = arith.constant 0 : index
      %13 = vector.load %arg9[%c0_11, %c0_12] : memref<8x128xf32, #tpu.memory_space<vmem>>, vector<8x128xf32>
      tpu.vector_store %arg9[%c0_11, %c0_12], %12 {strides = array<i32>} : memref<8x128xf32, #tpu.memory_space<vmem>>, vector<8x128xf32>,
    } else {
    }
    %c0 = arith.constant 0 : index
    %c0_1 = arith.constant 0 : index
    %3 = vector.load %arg9[%c0, %c0_1] : memref<8x128xf32, #tpu.memory_space<vmem>>, vector<8x128xf32>
    %c0_2 = arith.constant 0 : index
    %c0_3 = arith.constant 0 : index
    %4 = vector.load %arg2[%c0_2, %c0_3] : memref<8x128xf32, #tpu.memory_space<vmem>>, vector<8x128xf32>
    %c0_4 = arith.constant 0 : index
    %c0_5 = arith.constant 0 : index
    %5 = vector.load %arg3[%c0_4, %c0_5] : memref<128x128xf32, #tpu.memory_space<vmem>>, vector<128x128xf32>
    %cst = arith.constant dense<0.000000e+00> : vector<8x128xf32>
    %6 = tpu.matmul %4, %5, %cst {dimension_numbers = #tpu.dot_dimension_numbers<[1], [1], [0], [0], [0, 0, 1, 0], [], []>} : vector<8x128xf32>, vector<128x128xf32>, vector<8x128xf32> -> vector<8x128xf32>
    %7 = arith.addf %3, %6 : vector<8x128xf32>
    %c0_6 = arith.constant 0 : index
    %c0_7 = arith.constant 0 : index
    %8 = vector.load %arg9[%c0_6, %c0_7] : memref<8x128xf32, #tpu.memory_space<vmem>>, vector<8x128xf32>
    tpu.vector_store %arg9[%c0_6, %c0_7], %7 {strides = array<i32>} : memref<8x128xf32, #tpu.memory_space<vmem>>, vector<8x128xf32>,
    %c0_i32_8 = arith.constant 0 : i32
    %9 = arith.cmpi eq, %arg1, %c0_i32_8 : i32
    %10 = arith.extui %9 : i1 to i32
    %c0_i32_9 = arith.constant 0 : i32
    %11 = arith.cmpi ne, %10, %c0_i32_9 : i32
    scf.if %11 {
      %c0_10 = arith.constant 0 : index
      %c0_11 = arith.constant 0 : index
      %12 = vector.load %arg9[%c0_10, %c0_11] : memref<8x128xf32, #tpu.memory_space<vmem>>, vector<8x128xf32>
      %c0_12 = arith.constant 0 : index
      %c0_13 = arith.constant 0 : index
      %13 = vector.load %arg4[%c0_12, %c0_13] : memref<1x128xf32, #tpu.memory_space<vmem>>, vector<1x128xf32>
      %14 = vector.broadcast %13 : vector<1x128xf32> to vector<8x128xf32>
      %15 = arith.addf %12, %14 : vector<8x128xf32>
      %cst_14 = arith.constant dense<0.000000e+00> : vector<128xf32>
      %16 = vector.multi_reduction <add>, %15, %cst_14 [0] : vector<8x128xf32> to vector<128xf32>
      %17 = vector.shape_cast %16 : vector<128xf32> to vector<1x128xf32>
      %cst_15 = arith.constant 8.000000e+00 : f32
      %18 = vector.broadcast %cst_15 : f32 to vector<1x128xf32>
      %19 = arith.divf %17, %18 : vector<1x128xf32>
      %20 = vector.broadcast %19 : vector<1x128xf32> to vector<8x128xf32>
      %21 = arith.subf %15, %20 : vector<8x128xf32>
      %22 = arith.mulf %21, %21 : vector<8x128xf32>
      %cst_16 = arith.constant dense<0.000000e+00> : vector<128xf32>
      %23 = vector.multi_reduction <add>, %22, %cst_16 [0] : vector<8x128xf32> to vector<128xf32>
      %24 = vector.shape_cast %23 : vector<128xf32> to vector<1x128xf32>
      %cst_17 = arith.constant 8.000000e+00 : f32
      %25 = vector.broadcast %cst_17 : f32 to vector<1x128xf32>
      %26 = arith.divf %24, %25 : vector<1x128xf32>
      %cst_18 = arith.constant 9.99999974E-6 : f32
      %27 = vector.broadcast %cst_18 : f32 to vector<1x128xf32>
      %28 = arith.addf %26, %27 : vector<1x128xf32>
      %29 = math.rsqrt %28 : vector<1x128xf32>
      %c0_19 = arith.constant 0 : index
      %c0_20 = arith.constant 0 : index
      %30 = vector.load %arg5[%c0_19, %c0_20] : memref<1x128xf32, #tpu.memory_space<vmem>>, vector<1x128xf32>
      %31 = vector.broadcast %29 : vector<1x128xf32> to vector<8x128xf32>
      %32 = arith.mulf %21, %31 : vector<8x128xf32>
      %33 = vector.broadcast %30 : vector<1x128xf32> to vector<8x128xf32>
      %34 = arith.mulf %33, %32 : vector<8x128xf32>
      %c0_21 = arith.constant 0 : index
      %c0_22 = arith.constant 0 : index
      %35 = vector.load %arg6[%c0_21, %c0_22] : memref<1x128xf32, #tpu.memory_space<vmem>>, vector<1x128xf32>
      %36 = vector.broadcast %35 : vector<1x128xf32> to vector<8x128xf32>
      %37 = arith.addf %34, %36 : vector<8x128xf32>
      %38 = arith.negf %37 : vector<8x128xf32>
      %39 = math.exp %38 : vector<8x128xf32>
      %cst_23 = arith.constant 1.000000e+00 : f32
      %40 = vector.broadcast %cst_23 : f32 to vector<8x128xf32>
      %41 = arith.addf %40, %39 : vector<8x128xf32>
      %42 = arith.divf %40, %41 : vector<8x128xf32>
      %43 = arith.mulf %37, %42 : vector<8x128xf32>
      %c0_24 = arith.constant 0 : index
      %c0_25 = arith.constant 0 : index
      %44 = vector.load %arg7[%c0_24, %c0_25] : memref<8x128xf32, #tpu.memory_space<vmem>>, vector<8x128xf32>
      %45 = arith.addf %43, %44 : vector<8x128xf32>
      %c0_26 = arith.constant 0 : index
      %c0_27 = arith.constant 0 : index
      %46 = vector.load %arg8[%c0_26, %c0_27] : memref<8x128xf32, #tpu.memory_space<vmem>>, vector<8x128xf32>
      tpu.vector_store %arg8[%c0_26, %c0_27], %45 {strides = array<i32>} : memref<8x128xf32, #tpu.memory_space<vmem>>, vector<8x128xf32>,
    } else {
    }
    return
  }
  func.func @transform_0(%arg0: i32, %arg1: i32) -> (i32, i32) {
    %c0_i32 = arith.constant 0 : i32
    %c0_i32_0 = arith.constant 0 : i32
    return %c0_i32, %arg1 : i32, i32
  }
  func.func @transform_1(%arg0: i32, %arg1: i32) -> (i32, i32) {
    %c0_i32 = arith.constant 0 : i32
    return %arg0, %arg1 : i32, i32
  }
  func.func @transform_2(%arg0: i32, %arg1: i32) -> (i32, i32) {
    %c0_i32 = arith.constant 0 : i32
    %c0_i32_0 = arith.constant 0 : i32
    return %c0_i32, %arg0 : i32, i32
  }
  func.func @transform_3(%arg0: i32, %arg1: i32) -> (i32, i32) {
    %c0_i32 = arith.constant 0 : i32
    %c0_i32_0 = arith.constant 0 : i32
    return %c0_i32, %arg0 : i32, i32
  }
  func.func @transform_4(%arg0: i32, %arg1: i32) -> (i32, i32) {
    %c0_i32 = arith.constant 0 : i32
    %c0_i32_0 = arith.constant 0 : i32
    return %c0_i32, %arg0 : i32, i32
  }
  func.func @transform_5(%arg0: i32, %arg1: i32) -> (i32, i32) {
    %c0_i32 = arith.constant 0 : i32
    %c0_i32_0 = arith.constant 0 : i32
    return %c0_i32, %arg0 : i32, i32
  }
  func.func @transform_6(%arg0: i32, %arg1: i32) -> (i32, i32) {
    %c0_i32 = arith.constant 0 : i32
    %c0_i32_0 = arith.constant 0 : i32
    return %c0_i32, %arg0 : i32, i32
  }
}

</mosaic_0001>

<bundles_post_ra>
// kernel: tpu_custom_call.1
= control target key start
LH: loop header
LB: loop body
LE: loop exit
PB: predicated region body
PF: predicated region fallthrough
CT: control target
= control target key end

     0   :  { %11 = vsyncpa [#allocation4], 0  ;;  %s391_s0 = inlined_call_operand.hbm [shape: f32[8,128], index: 0, kind: input, shape index: {}]   ;;  %s392_s1 = inlined_call_operand.hbm [shape: f32[128,128], index: 1, kind: input, shape index: {}]   ;;  %s393_s2 = inlined_call_operand.vmem [shape: f32[1,128], index: 2, kind: input, shape index: {}]   ;;  %s394_s3 = inlined_call_operand.vmem [shape: f32[1,128], index: 3, kind: input, shape index: {}]   ;;  %s395_s4 = inlined_call_operand.vmem [shape: f32[1,128], index: 4, kind: input, shape index: {}]   ;;  %s396_s5 = inlined_call_operand.hbm [shape: f32[8,128], index: 5, kind: input, shape index: {}]   ;;  %s397_s6 = inlined_call_operand.hbm [shape: f32[8,128], index: 6, kind: output, shape index: {}]  }
   0x1   :  { %12 = vsyncpa [#allocation7], 0  ;;  %s29_s23 = sshll.u32 %s392_s1, 4  ;;  %s30_s23 = int_to_ptr.hbm [resolvable:$true] %s29_s23 }
   0x2   :  { %13 = vsyncpa [#allocation5], 0  ;;  %s328_s24 = smov [#allocation6]   ;;  %s19_s28 = sshll.u32 %s391_s0, 4  ;;  %s20_s28 = int_to_ptr.hbm [resolvable:$true] %s19_s28 }
   0x3   :  { %s31_s25 = sshll.u32 %s328_s24, 4  ;;  %s329_s29 = smov 128   ;;  %s32_s25 = int_to_ptr.vmem [resolvable:$true] %s31_s25 }
   0x4   :  { %s330_s30 = smov 8   ;;  %s331_s7 = smov [#allocation3]  }
   0x5   :  { %37 = dma.hbm_to_vmem [thread:$0]  %s30_s23, 2048, %s32_s25, [#allocation7], %s329_s29, %s329_s29, %s330_s30  }
   0x6   :  { %s21_s8 = sshll.u32 %s331_s7, 4  ;;  %s49_s11 = sshll.u32 %s396_s5, 4  ;;  %s22_s8 = int_to_ptr.vmem [resolvable:$true] %s21_s8  ;;  %s50_s11 = int_to_ptr.hbm [resolvable:$true] %s49_s11 }
   0x7   :  { %24 = dma.hbm_to_vmem [thread:$0]  %s20_s28, 128, %s22_s8, [#allocation4]  }
   0x8   :  { %s332_s1 = smov [#allocation8]  }
   0x9   :  { %s51_s12 = sshll.u32 %s332_s1, 4  ;;  %s52_s12 = int_to_ptr.vmem [resolvable:$true] %s51_s12 }
   0xa   :  { %54 = dma.hbm_to_vmem [thread:$0]  %s50_s11, 128, %s52_s12, [#allocation7]  }
   0xb   :  { %322 = dma.done.wait [#allocation4], 128  }
   0xc   :  { %323 = vsyncadd [#allocation4], 4294967168 }
   0xd   :  { %324 = dma.done.wait [#allocation7], 2176  }
   0xe   :  { %325 = vsyncadd [#allocation7], 4294965120  ;;  %v89_v0 = vld [vmem:[#allocation6 + $0x78] sm:$0xff]  ;;  %v88_v1 = vld [vmem:[#allocation6 + $0x70] sm:$0xff]  ;;  %v333_v17 = vmov 8.0   ;;  %s196_s18 = sshll.u32 %s397_s6, 4  ;;  %s197_s18 = int_to_ptr.hbm [resolvable:$true] %s196_s18 }
   0xf   :  { %90 = vmatpush.xpose.msra.mxu0 %v89_v0  ;;  %v87_v2 = vld [vmem:[#allocation6 + $0x68] sm:$0xff]  ;;  %v86_v3 = vld [vmem:[#allocation6 + $0x60] sm:$0xff]  ;;  %v85_v4 = vld [vmem:[#allocation6 + $0x58] sm:$0xff]  ;;  %218 = vrcp.f32 %v333_v17 }
  0x10   :  { %v84_v5 = vld [vmem:[#allocation6 + $0x50] sm:$0xff]  ;;  %v83_v6 = vld [vmem:[#allocation6 + $0x48] sm:$0xff]  ;;  %v82_v7 = vld [vmem:[#allocation6 + $0x40] sm:$0xff] }
  0x11   :  { %v81_v8 = vld [vmem:[#allocation6 + $0x38] sm:$0xff]  ;;  %v80_v9 = vld [vmem:[#allocation6 + $0x30] sm:$0xff]  ;;  %v79_v10 = vld [vmem:[#allocation6 + $0x28] sm:$0xff] }
  0x12   :  { %v78_v11 = vld [vmem:[#allocation6 + $0x20] sm:$0xff]  ;;  %v77_v12 = vld [vmem:[#allocation6 + $0x18] sm:$0xff]  ;;  %v76_v13 = vld [vmem:[#allocation6 + $0x10] sm:$0xff] }
  0x13   :  { %91 = vmatpush.xpose.msra.mxu0 %v88_v1  ;;  %v75_v14 = vld [vmem:[#allocation6 + $0x8] sm:$0xff]  ;;  %v74_v15 = vld [vmem:[#allocation6] sm:$0xff]  ;;  %v73_v16 = vld [vmem:[#allocation3] sm:$0xff] }
  0x14   :  { %v215_v20 = vld [vmem:[%s393_s2] ss:$0 sm:$0xff] }
  0x15   :  { %v219_v18 = vpop.eup %218  ;;  %v216_v50 = vld [vmem:[%s394_s3] ss:$0 sm:$0xff]  ;;  %s334_s3 = smov [#allocation9]  }
  0x16   :  { %v128_v19 = vmul.f32 8.0, %v219_v18  ;;  %vm132_vm0 = vweird.f32 %v219_v18  ;;  %v217_v53 = vld [vmem:[%s395_s4] ss:$0 sm:$0xff]  ;;  %s194_s4 = sshll.u32 %s334_s3, 4  ;;  %s195_s4 = int_to_ptr.vmem [resolvable:$true] %s194_s4 }
  0x17   :  { %92 = vmatpush.xpose.msra.mxu0 %v87_v2 }
  0x18   :  { %v129_v22 = vsub.f32 1.0, %v128_v19 }
  0x1a   :  { %v130_v25 = vmul.f32 %v219_v18, %v129_v22 }
  0x1b   :  { %93 = vmatpush.xpose.msra.mxu0 %v86_v3 }
  0x1c   :  { %v131_v28 = vadd.f32 %v219_v18, %v130_v25 }
  0x1e   :  { %v133_v31 = vsel %vm132_vm0, %v219_v18, %v131_v28 }
  0x1f   :  { %94 = vmatpush.xpose.msra.mxu0 %v85_v4 }
  0x23   :  { %95 = vmatpush.xpose.msra.mxu0 %v84_v5  ;;  %v186_v5 = vld [vmem:[#allocation8] sm:$0xff] }
  0x27   :  { %96 = vmatpush.xpose.msra.mxu0 %v83_v6 }
  0x2b   :  { %97 = vmatpush.xpose.msra.mxu0 %v82_v7 }
  0x2f   :  { %98 = vmatpush.xpose.msra.mxu0 %v81_v8 }
  0x33   :  { %99 = vmatpush.xpose.msra.mxu0 %v80_v9 }
  0x37   :  { %100 = vmatpush.xpose.msra.mxu0 %v79_v10 }
  0x3b   :  { %101 = vmatpush.xpose.msra.mxu0 %v78_v11 }
  0x3f   :  { %102 = vmatpush.xpose.msra.mxu0 %v77_v12 }
  0x43   :  { %103 = vmatpush.xpose.msra.mxu0 %v76_v13 }
  0x47   :  { %104 = vmatpush.xpose.msra.mxu0 %v75_v14 }
  0x4b   :  { %105 = vmatpush.xpose.msra.mxu0 %v74_v15 }
  0x4e   :  { %106 = vmatmul.f32.vlgmr.msra.gmra.mxu0 %v73_v16 }
  0xcb   :  { %v107_v21 = vpop.f32.mrf.mxu0 }
  0xcc   :  { %v120_v23 = vadd.f32 %v215_v20, %v107_v21 }
  0xce   :  { %v121_v24 = vrot.slane %v120_v23, 4 }
  0xd0   :  { %v122_v26 = vadd.f32 %v121_v24, %v120_v23 }
  0xd2   :  { %v123_v27 = vrot.slane %v122_v26, 2 }
  0xd4   :  { %v124_v29 = vadd.f32 %v123_v27, %v122_v26 }
  0xd6   :  { %v125_v30 = vrot.slane %v124_v29, 1 }
  0xd8   :  { %v126_v32 = vadd.f32 %v125_v30, %v124_v29 }
  0xda   :  { %v134_v33 = vmul.f32 %v133_v31, %v126_v32 }
  0xdc   :  { %v135_v34 = vsub.f32 %v120_v23, %v134_v33 }
  0xde   :  { %v136_v35 = vmul.f32 %v135_v34, %v135_v34 }
  0xe0   :  { %v137_v36 = vrot.slane %v136_v35, 4 }
  0xe2   :  { %v138_v37 = vadd.f32 %v137_v36, %v136_v35 }
  0xe4   :  { %v139_v38 = vrot.slane %v138_v37, 2 }
  0xe6   :  { %v140_v39 = vadd.f32 %v139_v38, %v138_v37 }
  0xe8   :  { %v141_v40 = vrot.slane %v140_v39, 1 }
  0xea   :  { %v142_v41 = vadd.f32 %v141_v40, %v140_v39 }
  0xec   :  { %v143_v42 = vmul.f32 %v142_v41, %v133_v31 }
  0xee   :  { %v144_v43 = vadd.f32 1e-05, %v143_v42 }
  0xf0   :  { %220 = vrsqrt.f32 %v144_v43  ;;  %vm151_vm2 = vweird.f32 %v144_v43 }
  0xf6   :  { %v221_v44 = vpop.eup %220 }
  0xf7   :  { %v146_v45 = vmul.f32 %v221_v44, %v144_v43  ;;  %vm152_vm1 = vweird.f32 %v221_v44 }
  0xf8   :  { %vm153_vm3 = vmor %vm151_vm2, %vm152_vm1 }
  0xf9   :  { %v147_v46 = vmul.f32 %v221_v44, %v146_v45 }
  0xfb   :  { %v148_v47 = vmul.f32 0.5, %v147_v46 }
  0xfd   :  { %v149_v48 = vsub.f32 1.5, %v148_v47 }
  0xff   :  { %v150_v49 = vmul.f32 %v221_v44, %v149_v48 }
 0x101   :  { %v154_v51 = vsel %vm153_vm3, %v221_v44, %v150_v49 }
 0x102   :  { %v156_v52 = vmul.f32 %v154_v51, %v135_v34 }
 0x104   :  { %v160_v54 = vmul.f32 %v216_v50, %v156_v52 }
 0x106   :  { %v165_v55 = vadd.f32 %v217_v53, %v160_v54 }
 0x108   :  { %v207_v56 = vmul.f32 -1.442695, %v165_v55 }
 0x10a   :  { %222 = vpow2.f32 %v207_v56 }
 0x110   :  { %v223_v57 = vpop.eup %222 }
 0x111   :  { %v169_v58 = vadd.f32 1.0, %v223_v57 }
 0x113   :  { %224 = vrcp.f32 %v169_v58  ;;  %v181_v62 = vand.u32 2147483648, %v169_v58  ;;  %v179_v0 = vand.u32 2147483647, %v169_v58  ;;  %vm175_vm5 = vweird.f32 %v169_v58 }
 0x115   :  { %v182_v2 = vor.u32 1.1754944e-38, %v181_v62  ;;  %vm180_vm7 = vcmp.eq.f32.partialorder %v179_v0, 8.507059e+37 }
 0x119   :  { %v225_v59 = vpop.eup %224 }
 0x11a   :  { %v171_v60 = vmul.f32 %v225_v59, %v169_v58  ;;  %vm176_vm4 = vweird.f32 %v225_v59 }
 0x11b   :  { %vm177_vm6 = vmor %vm175_vm5, %vm176_vm4 }
 0x11c   :  { %v172_v61 = vsub.f32 1.0, %v171_v60 }
 0x11e   :  { %v173_v63 = vmul.f32 %v225_v59, %v172_v61 }
 0x120   :  { %v174_v1 = vadd.f32 %v225_v59, %v173_v63 }
 0x122   :  { %v178_v3 = vsel %vm177_vm6, %v225_v59, %v174_v1 }
 0x123   :  { %v183_v4 = vsel %vm180_vm7, %v182_v2, %v178_v3 }
 0x124   :  { %v185_v6 = vmul.f32 %v183_v4, %v165_v55 }
 0x126   :  { %v187_v7 = vadd.f32 %v186_v5, %v185_v6 }
 0x128   :  { %188 = vst [vmem:[#allocation9] sm:$0xff] %v187_v7 }
 0x129   :  { %199 = dma.vmem_to_hbm [thread:$0]  %s195_s4, 128, %s197_s18, [#allocation5]  }
 0x12a   :  { %326 = dma.done.wait [#allocation5], 128  }
 0x12b   :  { %327 = vsyncadd [#allocation5], 4294967168 }
 0x12c   :  { %204 = vsyncpa [#allocation4], 1 }
 0x12d   :  { %205 = vsyncpa [#allocation7], 1 }
 0x12e   :  { %206 = vsyncpa [#allocation5], 1 }

</bundles_post_ra>
